<compile_context>
chip_gen: v5e
topology: v5e:2x2
jax: 0.10.0
libtpu: 0.0.40
codegen_flags: <defaults>
</compile_context>

<pallas_src>
import jax
import jax.numpy as jnp
from jax.experimental import pallas as pl
from jax.experimental.pallas import tpu as pltpu


TILE_B_MAX = 2048   # biggest batch tile; footprint stays well under scoped VMEM
LANE = 128          # lane-dense output width (pad out_dim -> 128)
NEG_INF = -1e30     # bias for padded classes: exp(NEG_INF - m) == 0.0 exactly


def _round_up(n, m):
    return ((n + m - 1) // m) * m


def _mlp_kernel(x_ref,
                w1_ref, b1_ref,
                w2_ref, b2_ref,
                w3_ref, b3_ref,
                w4_ref, b4_ref,
                out_ref):
    # MXU operands in bf16, accumulation + all elementwise math in f32.
    x = x_ref[...].astype(jnp.bfloat16)

    # Layer 1: Linear(input_dim, 256) + ReLU   (Dropout = identity at inference)
    h1 = jnp.dot(x, w1_ref[...], preferred_element_type=jnp.float32) + b1_ref[...]
    h1 = jnp.maximum(h1, 0.0)

    # Layer 2: Linear(256, 128) + ReLU         (Dropout = identity at inference)
    h2 = jnp.dot(h1.astype(jnp.bfloat16), w2_ref[...],
                 preferred_element_type=jnp.float32) + b2_ref[...]
    h2 = jnp.maximum(h2, 0.0)

    # Layer 3: Linear(128, 64) + ReLU
    h3 = jnp.dot(h2.astype(jnp.bfloat16), w3_ref[...],
                 preferred_element_type=jnp.float32) + b3_ref[...]
    h3 = jnp.maximum(h3, 0.0)

    # Layer 4: Linear(64, 128-padded output). Padded columns have weight 0 and
    # bias -1e30, so they contribute exp(-huge) == 0 to the softmax below.
    logits = jnp.dot(h3.astype(jnp.bfloat16), w4_ref[...],
                     preferred_element_type=jnp.float32) + b4_ref[...]

    # Numerically stable softmax over the class axis with an EXACT divide
    # (keeps row sums == 1 to f32 rounding; approx reciprocal was too loose).
    m = jnp.max(logits, axis=-1, keepdims=True)
    e = jnp.exp(logits - m)
    denom = jnp.sum(e, axis=-1, keepdims=True)
    out_ref[...] = e / denom


def cirrhosis_predictor(x, params, tile_b=None):
    """Run the fused MLP kernel. x: [B, input_dim] float32 -> [B, out_dim] f32."""
    (w1, b1), (w2, b2), (w3, b3), (w4, b4) = params
    B, in_dim = x.shape
    out_dim = w4.shape[1]

    # ---- Lane-dense output: pad the last layer to 128 output lanes. ----
    pad_n = _round_up(max(out_dim, 1), LANE)
    w4p = jnp.zeros((w4.shape[0], pad_n), w4.dtype).at[:, :out_dim].set(w4)
    b4p = jnp.full((1, pad_n), NEG_INF, jnp.float32).at[:, :out_dim].set(
        b4.astype(jnp.float32))

    # ---- Batch tile selection. ----
    b8 = _round_up(B, 8)
    if tile_b is None:
        # Aim for >=2 grid steps when the batch allows it (v7x: 2 TensorCores
        # share the "parallel" grid axis); cap at TILE_B_MAX.
        half = _round_up(pl.cdiv(b8, 2), 8)
        tile_b = max(8, min(TILE_B_MAX, half, b8))
    tile_b = _round_up(tile_b, 8)

    b_pad = _round_up(B, tile_b)
    if b_pad != B:
        x = jnp.pad(x, ((0, b_pad - B), (0, 0)))
    n_tiles = b_pad // tile_b

    # x/out tiled along the batch grid; weights/biases resident (constant index).
    const_spec = lambda arr: pl.BlockSpec(arr.shape, lambda i: (0, 0))

    flops = 2 * b_pad * (in_dim * 256 + 256 * 128 + 128 * 64 + 64 * pad_n)
    weight_bytes = (
        int(w1.size) * w1.dtype.itemsize + int(b1.size) * 4
        + int(w2.size) * w2.dtype.itemsize + int(b2.size) * 4
        + int(w3.size) * w3.dtype.itemsize + int(b3.size) * 4
        + int(w4p.size) * w4p.dtype.itemsize + int(b4p.size) * 4)
    bytes_accessed = b_pad * in_dim * 4 + weight_bytes + b_pad * pad_n * 4
    cost = pl.CostEstimate(flops=flops,
                           transcendentals=b_pad * pad_n,
                           bytes_accessed=bytes_accessed)

    out = pl.pallas_call(
        _mlp_kernel,
        out_shape=jax.ShapeDtypeStruct((b_pad, pad_n), jnp.float32),
        grid=(n_tiles,),
        in_specs=[
            pl.BlockSpec((tile_b, in_dim), lambda i: (i, 0)),
            const_spec(w1), const_spec(b1),
            const_spec(w2), const_spec(b2),
            const_spec(w3), const_spec(b3),
            const_spec(w4p), const_spec(b4p),
        ],
        out_specs=pl.BlockSpec((tile_b, pad_n), lambda i: (i, 0)),
        compiler_params=pltpu.CompilerParams(
            dimension_semantics=("parallel",),      # v7x: shard batch over 2 TCs
            vmem_limit_bytes=48 * 1024 * 1024),     # headroom on v5e; < v7x physical
        cost_estimate=cost,
    )(x, w1, b1, w2, b2, w3, b3, w4p, b4p)

    return out[:B, :out_dim]


def init_params(key, input_dim, output_dim=3):
    """Deterministic synthetic params. Weights [in, out] in bf16, biases f32."""
    dims = [(input_dim, 256), (256, 128), (128, 64), (64, output_dim)]
    params = []
    for i, (din, dout) in enumerate(dims):
        kw, kb = jax.random.split(jax.random.fold_in(key, i))
        scale = 1.0 / jnp.sqrt(jnp.float32(din))
        w = jax.random.uniform(kw, (din, dout), jnp.float32, -scale, scale)
        b = jax.random.uniform(kb, (1, dout), jnp.float32, -scale, scale)
        params.append((w.astype(jnp.bfloat16), b))
    return params


def reference(x, params):
    """Pure-JAX reference using the same bf16 matmul / f32 accumulate recipe."""
    h = x
    for i, (w, b) in enumerate(params):
        h = jnp.dot(h.astype(jnp.bfloat16), w,
                    preferred_element_type=jnp.float32) + b
        if i < len(params) - 1:
            h = jnp.maximum(h, 0.0)
    return jax.nn.softmax(h, axis=1)


if __name__ == "__main__":
    key = jax.random.PRNGKey(0)
    B, input_dim, output_dim = 8, 32, 3

    kx, kp = jax.random.split(key)
    x = jax.random.normal(kx, (B, input_dim), jnp.float32)
    params = init_params(kp, input_dim, output_dim)

    out = jax.block_until_ready(cirrhosis_predictor(x, params))
    ref = reference(x, params)
    assert out.shape == (B, output_dim)
    assert jnp.allclose(jnp.sum(out, axis=1), 1.0, atol=2e-3)
    assert jnp.allclose(out, ref, atol=5e-3, rtol=5e-3)

    # Non-multiple batch: exercises zero-padding + a multi-step "parallel" grid
    # (default tile picker yields >=2 grid steps here).
    x2 = jax.random.normal(jax.random.fold_in(key, 7), (130, input_dim), jnp.float32)
    out2 = jax.block_until_ready(cirrhosis_predictor(x2, params))
    ref2 = reference(x2, params)
    assert out2.shape == (130, output_dim)
    assert jnp.allclose(jnp.sum(out2, axis=1), 1.0, atol=2e-3)
    assert jnp.allclose(out2, ref2, atol=5e-3, rtol=5e-3)

    # Explicit small tile: padding + 3 grid steps.
    out3 = jax.block_until_ready(cirrhosis_predictor(x2, params, tile_b=64))
    assert out3.shape == (130, output_dim)
    assert jnp.allclose(out3, ref2, atol=5e-3, rtol=5e-3)

    print("KERNEL_OK")
</pallas_src>

<mosaic_0001>
module attributes {stable_mosaic.version = 11 : i64} {
  func.func @_mlp_kernel(%arg0: i32, %arg1: memref<8x32xf32, #tpu.memory_space<vmem>>, %arg2: memref<32x256xbf16, #tpu.memory_space<vmem>>, %arg3: memref<1x256xf32, #tpu.memory_space<vmem>>, %arg4: memref<256x128xbf16, #tpu.memory_space<vmem>>, %arg5: memref<1x128xf32, #tpu.memory_space<vmem>>, %arg6: memref<128x64xbf16, #tpu.memory_space<vmem>>, %arg7: memref<1x64xf32, #tpu.memory_space<vmem>>, %arg8: memref<64x128xbf16, #tpu.memory_space<vmem>>, %arg9: memref<1x128xf32, #tpu.memory_space<vmem>>, %arg10: memref<8x128xf32, #tpu.memory_space<vmem>>) attributes {dimension_semantics = [#tpu.dimension_semantics<parallel>], iteration_bounds = array<i64: 1>, scalar_prefetch = 0 : i64, scratch_operands = 0 : i64, tpu.core_type = #tpu.core_type<tc>, window_params = [{transform_indices = @transform_0, window_bounds = array<i64: 8, 32>}, {pipeline_mode = #tpu.pipeline_mode<synchronous>, transform_indices = @transform_1, window_bounds = array<i64: 32, 256>}, {pipeline_mode = #tpu.pipeline_mode<synchronous>, transform_indices = @transform_2, window_bounds = array<i64: 1, 256>}, {pipeline_mode = #tpu.pipeline_mode<synchronous>, transform_indices = @transform_3, window_bounds = array<i64: 256, 128>}, {pipeline_mode = #tpu.pipeline_mode<synchronous>, transform_indices = @transform_4, window_bounds = array<i64: 1, 128>}, {pipeline_mode = #tpu.pipeline_mode<synchronous>, transform_indices = @transform_5, window_bounds = array<i64: 128, 64>}, {pipeline_mode = #tpu.pipeline_mode<synchronous>, transform_indices = @transform_6, window_bounds = array<i64: 1, 64>}, {pipeline_mode = #tpu.pipeline_mode<synchronous>, transform_indices = @transform_7, window_bounds = array<i64: 64, 128>}, {pipeline_mode = #tpu.pipeline_mode<synchronous>, transform_indices = @transform_8, window_bounds = array<i64: 1, 128>}, {transform_indices = @transform_9, window_bounds = array<i64: 8, 128>}]} {
    %c0 = arith.constant 0 : index
    %c0_0 = arith.constant 0 : index
    %0 = vector.load %arg1[%c0, %c0_0] : memref<8x32xf32, #tpu.memory_space<vmem>>, vector<8x32xf32>
    %1 = arith.truncf %0 : vector<8x32xf32> to vector<8x32xbf16>
    %c0_1 = arith.constant 0 : index
    %c0_2 = arith.constant 0 : index
    %2 = vector.load %arg2[%c0_1, %c0_2] : memref<32x256xbf16, #tpu.memory_space<vmem>>, vector<32x256xbf16>
    %cst = arith.constant dense<0.000000e+00> : vector<8x256xf32>
    %3 = tpu.matmul %1, %2, %cst {dimension_numbers = #tpu.dot_dimension_numbers<[1], [0], [0], [1], [0, 0, 1, 1], [], []>} : vector<8x32xbf16>, vector<32x256xbf16>, vector<8x256xf32> -> vector<8x256xf32>
    %c0_3 = arith.constant 0 : index
    %c0_4 = arith.constant 0 : index
    %4 = vector.load %arg3[%c0_3, %c0_4] : memref<1x256xf32, #tpu.memory_space<vmem>>, vector<1x256xf32>
    %5 = vector.broadcast %4 : vector<1x256xf32> to vector<8x256xf32>
    %6 = arith.addf %3, %5 : vector<8x256xf32>
    %cst_5 = arith.constant 0.000000e+00 : f32
    %7 = vector.broadcast %cst_5 : f32 to vector<8x256xf32>
    %8 = arith.maximumf %6, %7 : vector<8x256xf32>
    %9 = arith.truncf %8 : vector<8x256xf32> to vector<8x256xbf16>
    %c0_6 = arith.constant 0 : index
    %c0_7 = arith.constant 0 : index
    %10 = vector.load %arg4[%c0_6, %c0_7] : memref<256x128xbf16, #tpu.memory_space<vmem>>, vector<256x128xbf16>
    %cst_8 = arith.constant dense<0.000000e+00> : vector<8x128xf32>
    %11 = tpu.matmul %9, %10, %cst_8 {dimension_numbers = #tpu.dot_dimension_numbers<[1], [0], [0], [1], [0, 0, 1, 1], [], []>} : vector<8x256xbf16>, vector<256x128xbf16>, vector<8x128xf32> -> vector<8x128xf32>
    %c0_9 = arith.constant 0 : index
    %c0_10 = arith.constant 0 : index
    %12 = vector.load %arg5[%c0_9, %c0_10] : memref<1x128xf32, #tpu.memory_space<vmem>>, vector<1x128xf32>
    %13 = vector.broadcast %12 : vector<1x128xf32> to vector<8x128xf32>
    %14 = arith.addf %11, %13 : vector<8x128xf32>
    %cst_11 = arith.constant 0.000000e+00 : f32
    %15 = vector.broadcast %cst_11 : f32 to vector<8x128xf32>
    %16 = arith.maximumf %14, %15 : vector<8x128xf32>
    %17 = arith.truncf %16 : vector<8x128xf32> to vector<8x128xbf16>
    %c0_12 = arith.constant 0 : index
    %c0_13 = arith.constant 0 : index
    %18 = vector.load %arg6[%c0_12, %c0_13] : memref<128x64xbf16, #tpu.memory_space<vmem>>, vector<128x64xbf16>
    %cst_14 = arith.constant dense<0.000000e+00> : vector<8x64xf32>
    %19 = tpu.matmul %17, %18, %cst_14 {dimension_numbers = #tpu.dot_dimension_numbers<[1], [0], [0], [1], [0, 0, 1, 1], [], []>} : vector<8x128xbf16>, vector<128x64xbf16>, vector<8x64xf32> -> vector<8x64xf32>
    %c0_15 = arith.constant 0 : index
    %c0_16 = arith.constant 0 : index
    %20 = vector.load %arg7[%c0_15, %c0_16] : memref<1x64xf32, #tpu.memory_space<vmem>>, vector<1x64xf32>
    %21 = vector.broadcast %20 : vector<1x64xf32> to vector<8x64xf32>
    %22 = arith.addf %19, %21 : vector<8x64xf32>
    %cst_17 = arith.constant 0.000000e+00 : f32
    %23 = vector.broadcast %cst_17 : f32 to vector<8x64xf32>
    %24 = arith.maximumf %22, %23 : vector<8x64xf32>
    %25 = arith.truncf %24 : vector<8x64xf32> to vector<8x64xbf16>
    %c0_18 = arith.constant 0 : index
    %c0_19 = arith.constant 0 : index
    %26 = vector.load %arg8[%c0_18, %c0_19] : memref<64x128xbf16, #tpu.memory_space<vmem>>, vector<64x128xbf16>
    %cst_20 = arith.constant dense<0.000000e+00> : vector<8x128xf32>
    %27 = tpu.matmul %25, %26, %cst_20 {dimension_numbers = #tpu.dot_dimension_numbers<[1], [0], [0], [1], [0, 0, 1, 1], [], []>} : vector<8x64xbf16>, vector<64x128xbf16>, vector<8x128xf32> -> vector<8x128xf32>
    %c0_21 = arith.constant 0 : index
    %c0_22 = arith.constant 0 : index
    %28 = vector.load %arg9[%c0_21, %c0_22] : memref<1x128xf32, #tpu.memory_space<vmem>>, vector<1x128xf32>
    %29 = vector.broadcast %28 : vector<1x128xf32> to vector<8x128xf32>
    %30 = arith.addf %27, %29 : vector<8x128xf32>
    %cst_23 = arith.constant dense<0xFF800000> : vector<8xf32>
    %31 = vector.multi_reduction <maximumf>, %30, %cst_23 [1] : vector<8x128xf32> to vector<8xf32>
    %32 = vector.shape_cast %31 : vector<8xf32> to vector<8x1xf32>
    %33 = vector.broadcast %32 : vector<8x1xf32> to vector<8x128xf32>
    %34 = arith.subf %30, %33 : vector<8x128xf32>
    %35 = math.exp %34 : vector<8x128xf32>
    %cst_24 = arith.constant dense<0.000000e+00> : vector<8xf32>
    %36 = vector.multi_reduction <add>, %35, %cst_24 [1] : vector<8x128xf32> to vector<8xf32>
    %37 = vector.shape_cast %36 : vector<8xf32> to vector<8x1xf32>
    %38 = vector.broadcast %37 : vector<8x1xf32> to vector<8x128xf32>
    %39 = arith.divf %35, %38 : vector<8x128xf32>
    %c0_25 = arith.constant 0 : index
    %c0_26 = arith.constant 0 : index
    %40 = vector.load %arg10[%c0_25, %c0_26] : memref<8x128xf32, #tpu.memory_space<vmem>>, vector<8x128xf32>
    tpu.vector_store %arg10[%c0_25, %c0_26], %39 {strides = array<i32>} : memref<8x128xf32, #tpu.memory_space<vmem>>, vector<8x128xf32>,
    return
  }
  func.func @transform_0(%arg0: i32) -> (i32, i32) {
    %c0_i32 = arith.constant 0 : i32
    %c0_i32_0 = arith.constant 0 : i32
    return %arg0, %c0_i32 : i32, i32
  }
  func.func @transform_1(%arg0: i32) -> (i32, i32) {
    %c0_i32 = arith.constant 0 : i32
    %c0_i32_0 = arith.constant 0 : i32
    %c0_i32_1 = arith.constant 0 : i32
    return %c0_i32, %c0_i32_0 : i32, i32
  }
  func.func @transform_2(%arg0: i32) -> (i32, i32) {
    %c0_i32 = arith.constant 0 : i32
    %c0_i32_0 = arith.constant 0 : i32
    %c0_i32_1 = arith.constant 0 : i32
    return %c0_i32, %c0_i32_0 : i32, i32
  }
  func.func @transform_3(%arg0: i32) -> (i32, i32) {
    %c0_i32 = arith.constant 0 : i32
    %c0_i32_0 = arith.constant 0 : i32
    %c0_i32_1 = arith.constant 0 : i32
    return %c0_i32, %c0_i32_0 : i32, i32
  }
  func.func @transform_4(%arg0: i32) -> (i32, i32) {
    %c0_i32 = arith.constant 0 : i32
    %c0_i32_0 = arith.constant 0 : i32
    %c0_i32_1 = arith.constant 0 : i32
    return %c0_i32, %c0_i32_0 : i32, i32
  }
  func.func @transform_5(%arg0: i32) -> (i32, i32) {
    %c0_i32 = arith.constant 0 : i32
    %c0_i32_0 = arith.constant 0 : i32
    %c0_i32_1 = arith.constant 0 : i32
    return %c0_i32, %c0_i32_0 : i32, i32
  }
  func.func @transform_6(%arg0: i32) -> (i32, i32) {
    %c0_i32 = arith.constant 0 : i32
    %c0_i32_0 = arith.constant 0 : i32
    %c0_i32_1 = arith.constant 0 : i32
    return %c0_i32, %c0_i32_0 : i32, i32
  }
  func.func @transform_7(%arg0: i32) -> (i32, i32) {
    %c0_i32 = arith.constant 0 : i32
    %c0_i32_0 = arith.constant 0 : i32
    %c0_i32_1 = arith.constant 0 : i32
    return %c0_i32, %c0_i32_0 : i32, i32
  }
  func.func @transform_8(%arg0: i32) -> (i32, i32) {
    %c0_i32 = arith.constant 0 : i32
    %c0_i32_0 = arith.constant 0 : i32
    %c0_i32_1 = arith.constant 0 : i32
    return %c0_i32, %c0_i32_0 : i32, i32
  }
  func.func @transform_9(%arg0: i32) -> (i32, i32) {
    %c0_i32 = arith.constant 0 : i32
    %c0_i32_0 = arith.constant 0 : i32
    return %arg0, %c0_i32 : i32, i32
  }
}

</mosaic_0001>

<bundles_post_ra>
// kernel: tpu_custom_call.1
= control target key start
LH: loop header
LB: loop body
LE: loop exit
PB: predicated region body
PF: predicated region fallthrough
CT: control target
= control target key end

     0   :  { %14 = vsyncpa [#allocation3], 0  ;;  %s813_s0 = inlined_call_operand.vmem [shape: f32[8,32], index: 0, kind: input, shape index: {}]   ;;  %s814_s1 = inlined_call_operand.vmem [shape: bf16[32,256], index: 1, kind: input, shape index: {}]   ;;  %s815_s2 = inlined_call_operand.vmem [shape: f32[1,256], index: 2, kind: input, shape index: {}]   ;;  %s816_s3 = inlined_call_operand.hbm [shape: bf16[256,128], index: 3, kind: input, shape index: {}]   ;;  %s817_s4 = inlined_call_operand.vmem [shape: f32[1,128], index: 4, kind: input, shape index: {}]   ;;  %s818_s5 = inlined_call_operand.vmem [shape: bf16[128,64], index: 5, kind: input, shape index: {}]   ;;  %s819_s6 = inlined_call_operand.vmem [shape: f32[1,64], index: 6, kind: input, shape index: {}]   ;;  %s820_s7 = inlined_call_operand.vmem [shape: bf16[64,128], index: 7, kind: input, shape index: {}]   ;;  %s821_s8 = inlined_call_operand.vmem [shape: f32[1,128], index: 8, kind: input, shape index: {}]   ;;  %s822_s9 = inlined_call_operand.hbm [shape: f32[8,128], index: 9, kind: output, shape index: {}]  }
   0x1   :  { %15 = vsyncpa [#allocation4], 0  ;;  %s26_s11 = sshll.u32 %s816_s3, 4  ;;  %s678_s12 = smov [#allocation2]   ;;  %s27_s11 = int_to_ptr.hbm [resolvable:$true] %s26_s11 }
   0x2   :  { %s28_s13 = sshll.u32 %s678_s12, 4  ;;  %s679_s14 = smov 64   ;;  %s29_s13 = int_to_ptr.vmem [resolvable:$true] %s28_s13 }
   0x3   :  { %s680_s15 = smov 4  }
   0x4   :  { %34 = dma.hbm_to_vmem [thread:$0]  %s27_s11, 2048, %s29_s13, [#allocation3], %s679_s14, %s679_s14, %s680_s15  }
   0x5   :  { %674 = dma.done.wait [#allocation3], 2048  }
   0x6   :  { %675 = vsyncadd [#allocation3], 4294965248  ;;  %v462_v0 = vld [vmem:[%s814_s1 + $0x10] sm:$0xf]  ;;  %v586_v1 = vld [vmem:[%s814_s1 + $0x14] sm:$0xf0] }
   0x7   :  { %v585_v2 = vld [vmem:[%s814_s1 + $0x14] sm:$0xf]  ;;  %v463_v3 = vor.u32 %v586_v1, %v462_v0  ;;  %v464_v4 = vld [vmem:[%s814_s1 + $0x18] sm:$0xf0]  ;;  %v454_v5 = vld [vmem:[%s814_s1] sm:$0xf] }
   0x8   :  { %v584_v6 = vld [vmem:[%s814_s1 + $0x4] sm:$0xf0]  ;;  %v467_v7 = vor.u32 %v585_v2, %v464_v4  ;;  %v583_v8 = vld [vmem:[%s814_s1 + $0x4] sm:$0xf]  ;;  %v456_v9 = vld [vmem:[%s814_s1 + $0x8] sm:$0xf0] }
   0x9   :  { %92 = vmatpush.bf16.msra.mxu0 %v463_v3  ;;  %v455_v10 = vor.u32 %v584_v6, %v454_v5  ;;  %v50_v11 = vld [vmem:[%s813_s0] sm:$0xff]  ;;  %v594_v12 = vld [vmem:[#allocation2 + $0x38] sm:$0xff]  ;;  %v459_v14 = vor.u32 %v583_v8, %v456_v9  ;;  %v593_v15 = vld [vmem:[#allocation2 + $0x30] sm:$0xff]  ;;  %vm82_vm0 = vcmask 261120   ;;  %vm395_vm1 = vcmask 523264   ;;  %s442_s16 = sshll.u32 %s822_s9, 4  ;;  %s443_s16 = int_to_ptr.hbm [resolvable:$true] %s442_s16 }
   0xa   :  { %v602_v13 = vld [vmem:[#allocation2 + $0x78] sm:$0xff]  ;;  %105 = vmatpush.bf16.msra.mxu1 %v467_v7  ;;  %248 = vmatpush.bf16.msra.mxu2 %v594_v12  ;;  %v601_v16 = vld [vmem:[#allocation2 + $0x70] sm:$0xff]  ;;  %v51_v17 = vpack.c.bf16 %v50_v11, %v50_v11  ;;  %v592_v18 = vld [vmem:[#allocation2 + $0x28] sm:$0xff] }
   0xb   :  { %261 = vmatpush.bf16.msra.mxu3 %v602_v13  ;;  %v600_v19 = vld [vmem:[#allocation2 + $0x68] sm:$0xff]  ;;  %v591_v20 = vld [vmem:[#allocation2 + $0x20] sm:$0xff]  ;;  %v590_v22 = vld [vmem:[#allocation2 + $0x18] sm:$0xff] }
   0xc   :  { %v599_v21 = vld [vmem:[#allocation2 + $0x60] sm:$0xff]  ;;  %v598_v23 = vld [vmem:[#allocation2 + $0x58] sm:$0xff]  ;;  %v589_v24 = vld [vmem:[#allocation2 + $0x10] sm:$0xff] }
   0xd   :  { %93 = vmatpush.bf16.msra.mxu0 %v455_v10  ;;  %v597_v25 = vld [vmem:[#allocation2 + $0x50] sm:$0xff]  ;;  %v588_v26 = vld [vmem:[#allocation2 + $0x8] sm:$0xff]  ;;  %v587_v28 = vld [vmem:[#allocation2] sm:$0xff] }
   0xe   :  { %106 = vmatpush.bf16.msra.mxu1 %v459_v14  ;;  %249 = vmatpush.bf16.msra.mxu2 %v593_v15  ;;  %v596_v27 = vld [vmem:[#allocation2 + $0x48] sm:$0xff]  ;;  %v595_v29 = vld [vmem:[#allocation2 + $0x40] sm:$0xff]  ;;  %v610_v30 = vld [vmem:[%s818_s5 + $0x38] sm:$0xff] }
   0xf   :  { %262 = vmatpush.bf16.msra.mxu3 %v601_v16  ;;  %v609_v31 = vld [vmem:[%s818_s5 + $0x30] sm:$0xff]  ;;  %v608_v32 = vld [vmem:[%s818_s5 + $0x28] sm:$0xff]  ;;  %v607_v33 = vld [vmem:[%s818_s5 + $0x20] sm:$0xff] }
  0x10   :  { %468 = vmatmul.msk.bf16.vlgmr.msra.gmra.mxu0 %vm82_vm0, %v51_v17  ;;  %v606_v34 = vld [vmem:[%s818_s5 + $0x18] sm:$0xff]  ;;  %v56_v35 = vld [vmem:[%s815_s2] sm:$0x3]  ;;  %v605_v36 = vld [vmem:[%s818_s5 + $0x10] sm:$0xff] }
  0x11   :  { %469 = vmatmul.msk.bf16.vlgmr.msra.gmra.mxu1 %vm82_vm0, %v51_v17  ;;  %344 = vmatpush.bf16.msrb.mxu0 %v610_v30  ;;  %v58_v37 = vperm.slane %v56_v35, 0  ;;  %v59_v38 = vperm.slane %v56_v35, 1  ;;  %v604_v49 = vld [vmem:[%s818_s5 + $0x8] sm:$0xff]  ;;  %v603_v50 = vld [vmem:[%s818_s5] sm:$0xff]  ;;  %v614_v51 = vld [vmem:[%s820_s7 + $0x18] sm:$0xff] }
  0x12   :  { %250 = vmatpush.bf16.msra.mxu2 %v592_v18  ;;  %403 = vmatpush.bf16.msrb.mxu1 %v614_v51  ;;  %v613_v52 = vld [vmem:[%s820_s7 + $0x10] sm:$0xff]  ;;  %v612_v53 = vld [vmem:[%s820_s7 + $0x8] sm:$0xff]  ;;  %v619_v54 = vld [vmem:[%s817_s4] ss:$0 sm:$0xff] }
  0x13   :  { %263 = vmatpush.bf16.msra.mxu3 %v600_v19  ;;  %v611_v63 = vld [vmem:[%s820_s7] sm:$0xff] }
  0x14   :  { %v620_v0 = vld [vmem:[%s819_s6] ss:$0 sm:$0xff]  ;;  %s681_s6 = smov [#allocation5]  }
  0x15   :  { %345 = vmatpush.bf16.msrb.mxu0 %v609_v31  ;;  %v621_v6 = vld [vmem:[%s821_s8] ss:$0 sm:$0xff]  ;;  %s440_s7 = sshll.u32 %s681_s6, 4  ;;  %s441_s7 = int_to_ptr.vmem [resolvable:$true] %s440_s7 }
  0x16   :  { %251 = vmatpush.bf16.msra.mxu2 %v591_v20  ;;  %404 = vmatpush.bf16.msrb.mxu1 %v613_v52 }
  0x17   :  { %264 = vmatpush.bf16.msra.mxu3 %v599_v21 }
  0x19   :  { %346 = vmatpush.bf16.msrb.mxu0 %v608_v32 }
  0x1a   :  { %252 = vmatpush.bf16.msra.mxu2 %v590_v22  ;;  %405 = vmatpush.bf16.msrb.mxu1 %v612_v53 }
  0x1b   :  { %265 = vmatpush.bf16.msra.mxu3 %v598_v23 }
  0x1d   :  { %347 = vmatpush.bf16.msrb.mxu0 %v607_v33 }
  0x1e   :  { %253 = vmatpush.bf16.msra.mxu2 %v589_v24  ;;  %406 = vmatpush.bf16.msrb.mxu1 %v611_v63 }
  0x1f   :  { %266 = vmatpush.bf16.msra.mxu3 %v597_v25 }
  0x21   :  { %348 = vmatpush.bf16.msrb.mxu0 %v606_v34 }
  0x22   :  { %254 = vmatpush.bf16.msra.mxu2 %v588_v26 }
  0x23   :  { %267 = vmatpush.bf16.msra.mxu3 %v596_v27 }
  0x25   :  { %349 = vmatpush.bf16.msrb.mxu0 %v605_v36 }
  0x26   :  { %255 = vmatpush.bf16.msra.mxu2 %v587_v28 }
  0x27   :  { %268 = vmatpush.bf16.msra.mxu3 %v595_v29 }
  0x29   :  { %350 = vmatpush.bf16.msrb.mxu0 %v604_v49 }
  0x2d   :  { %351 = vmatpush.bf16.msrb.mxu0 %v603_v50 }
  0x8d   :  { %v95_v39 = vpop.f32.mrf.mxu0 }
  0x8e   :  { %v96_v40 = vadd.f32 %v95_v39, %v58_v37  ;;  %v108_v41 = vpop.f32.mrf.mxu1 }
  0x8f   :  { %v109_v42 = vadd.f32 %v108_v41, %v59_v38 }
  0x90   :  { %v112_v43 = vmax.f32 %v96_v40, 0.0 }
  0x91   :  { %v113_v44 = vmax.f32 %v109_v42, 0.0 }
  0x92   :  { %v114_v45 = vpack.c.bf16 %v112_v43, %v112_v43 }
  0x93   :  { %v115_v46 = vpack.c.bf16 %v113_v44, %v113_v44 }
  0x94   :  { %256 = vmatmul.bf16.vlgmr.msra.gmra.mxu2 %v114_v45 }
  0x95   :  { %269 = vmatmul.bf16.vlgmr.msra.gmra.mxu3 %v115_v46  ;;  %v97_v47 = vpop.f32.mrf.mxu0 }
  0x96   :  { %v110_v48 = vpop.f32.mrf.mxu1 }
 0x117   :  { %v257_v55 = vpop.f32.mrf.mxu2 }
 0x118   :  { %v258_v56 = vadd.f32 %v619_v54, %v257_v55  ;;  %v270_v57 = vpop.f32.mrf.mxu3 }
 0x11a   :  { %v271_v58 = vadd.f32 %v270_v57, %v258_v56 }
 0x11c   :  { %v274_v59 = vmax.f32 %v271_v58, 0.0 }
 0x11e   :  { %v275_v60 = vpack.c.bf16 %v274_v59, %v274_v59 }
 0x11f   :  { %v259_v61 = vpop.f32.mrf.mxu2 }
 0x120   :  { %v272_v62 = vpop.f32.mrf.mxu3  ;;  %352 = vmatmul.bf16.vlgmr.msrb.gmra.mxu0 %v275_v60 }
 0x19d   :  { %v353_v1 = vpop.f32.mrf.mxu0 }
 0x19e   :  { %v354_v2 = vadd.f32 %v620_v0, %v353_v1 }
 0x1a0   :  { %v357_v3 = vmax.f32 %v354_v2, 0.0 }
 0x1a2   :  { %v358_v4 = vpack.c.bf16 %v357_v3, %v357_v3 }
 0x1a4   :  { %582 = vmatmul.msk.bf16.vlgmr.msrb.gmra.mxu1 %vm395_vm1, %v358_v4 }
 0x1a5   :  { %v355_v5 = vpop.f32.mrf.mxu0 }
 0x221   :  { %v408_v7 = vpop.f32.mrf.mxu1 }
 0x222   :  { %v409_v8 = vadd.f32 %v621_v6, %v408_v7 }
 0x224   :  { %412 = vmax.xlane.f32.xlu0 %v409_v8 }
 0x229   :  { %v410_v9 = vpop.f32.mrf.mxu1 }
 0x297   :  { %v413_v10 = vpop.xlane.xlu0 %412 }
 0x298   :  { %v414_v11 = vsub.f32 %v409_v8, %v413_v10 }
 0x29a   :  { %v415_v12 = vmul.f32 1.442695, %v414_v11 }
 0x29c   :  { %622 = vpow2.f32 %v415_v12 }
 0x2a2   :  { %v623_v13 = vpop.eup %622 }
 0x2a3   :  { %417 = vadd.xlane.f32.xlu0 %v623_v13 }
 0x316   :  { %v418_v14 = vpop.xlane.xlu0 %417 }
 0x317   :  { %624 = vrcp.f32 %v418_v14  ;;  %v430_v18 = vand.u32 2147483648, %v418_v14  ;;  %v428_v20 = vand.u32 2147483647, %v418_v14  ;;  %vm424_vm3 = vweird.f32 %v418_v14 }
 0x319   :  { %v431_v22 = vor.u32 1.1754944e-38, %v430_v18  ;;  %vm429_vm5 = vcmp.eq.f32.partialorder %v428_v20, 8.507059e+37 }
 0x31d   :  { %v625_v15 = vpop.eup %624 }
 0x31e   :  { %v420_v16 = vmul.f32 %v625_v15, %v418_v14  ;;  %vm425_vm2 = vweird.f32 %v625_v15 }
 0x31f   :  { %vm426_vm4 = vmor %vm424_vm3, %vm425_vm2 }
 0x320   :  { %v421_v17 = vsub.f32 1.0, %v420_v16 }
 0x322   :  { %v422_v19 = vmul.f32 %v625_v15, %v421_v17 }
 0x324   :  { %v423_v21 = vadd.f32 %v625_v15, %v422_v19 }
 0x326   :  { %v427_v23 = vsel %vm426_vm4, %v625_v15, %v423_v21 }
 0x327   :  { %v432_v24 = vsel %vm429_vm5, %v431_v22, %v427_v23 }
 0x328   :  { %v433_v25 = vmul.f32 %v623_v13, %v432_v24 }
 0x32a   :  { %434 = vst [vmem:[#allocation5] sm:$0xff] %v433_v25 }
 0x32b   :  { %445 = dma.vmem_to_hbm [thread:$0]  %s441_s7, 128, %s443_s16, [#allocation4]  }
 0x32c   :  { %676 = dma.done.wait [#allocation4], 128  }
 0x32d   :  { %677 = vsyncadd [#allocation4], 4294967168 }
 0x32e   :  { %450 = vsyncpa [#allocation3], 1 }
 0x32f   :  { %451 = vsyncpa [#allocation4], 1 }

</bundles_post_ra>
